<compile_context>
chip_gen: v7x
topology: tpu7x:2x2x1
jax: 0.10.0
libtpu: 0.0.40
codegen_flags: <defaults>
</compile_context>

<pallas_src>
import jax
import jax.numpy as jnp
from jax.experimental import pallas as pl
from jax.experimental.pallas import tpu as pltpu

_PDIST_EPS = 1e-6  # PyTorch PairwiseDistance default eps (added to the difference)


def _triplet_kernel(a_ref, p_ref, n_ref, out_ref):
    # (tb, D) tiles; compute in f32 regardless of input dtype.
    a = a_ref[...].astype(jnp.float32)
    p = p_ref[...].astype(jnp.float32)
    n = n_ref[...].astype(jnp.float32)

    dp = a - p + _PDIST_EPS
    dn = a - n + _PDIST_EPS

    # Lane-axis reduce (XLU) + sqrt (EUP): both hide under the dominant input
    # DMA stream, so plain jnp ops are fine.
    pos = jnp.sqrt(jnp.sum(dp * dp, axis=-1))          # (tb,)
    neg = jnp.sqrt(jnp.sum(dn * dn, axis=-1))          # (tb,)

    # Single merged lane-dense store: row 0 = pos dist, row 1 = neg dist.
    out_ref[...] = jnp.concatenate(
        [pos.reshape(1, -1), neg.reshape(1, -1)], axis=0)


def _choose_block_rows(B: int, D: int, itemsize: int) -> int:
    # Per-row VMEM footprint per grid step:
    #   inputs (double-buffered): 2 * 3 * D * itemsize
    #   f32 compute intermediates (casts, dp, dn, squares): ~5 * D * 4
    per_row = 6 * D * itemsize + 5 * D * 4
    budget = 40 * 1024 * 1024          # headroom under the 48 MiB limit (v7x: 64 MiB phys)
    tb = budget // max(per_row, 1)
    tb = int(min(1024, max(128, tb)))  # cap raised to 1024 to amortize per-step overhead
    return (tb // 128) * 128           # multiple of 128 -> lane-dense output block


def triplet_loss(anchor, positive, negative, *, margin: float = 1.0,
                 reduction: str = 'mean', block_rows: int | None = None):
    assert anchor.shape == positive.shape == negative.shape
    assert anchor.ndim == 2
    if reduction not in ('mean', 'sum'):
        raise AssertionError('reduction should be mean or sum...')

    B, D = anchor.shape
    itemsize = jnp.dtype(anchor.dtype).itemsize

    tb = int(block_rows) if block_rows is not None else _choose_block_rows(B, D, itemsize)
    if tb >= B:
        tb = B                                   # single exact tile (full-dim block is legal)
    else:
        tb = max(128, (tb // 128) * 128)         # out lane-block must be 128-aligned
        if tb >= B:
            tb = B
    G = pl.cdiv(B, tb)                           # ragged last tile if tb doesn't divide B

    grid_spec = pltpu.PrefetchScalarGridSpec(
        num_scalar_prefetch=0,
        grid=(G,),
        in_specs=[
            pl.BlockSpec((tb, D), lambda i: (i, 0)),
            pl.BlockSpec((tb, D), lambda i: (i, 0)),
            pl.BlockSpec((tb, D), lambda i: (i, 0)),
        ],
        out_specs=pl.BlockSpec((2, tb), lambda i: (0, i)),
    )

    cost = pl.CostEstimate(
        flops=8 * B * D,
        transcendentals=2 * B,
        bytes_accessed=3 * B * D * itemsize + 2 * B * 4,
    )

    dists = pl.pallas_call(
        _triplet_kernel,
        out_shape=jax.ShapeDtypeStruct((2, B), jnp.float32),
        grid_spec=grid_spec,
        compiler_params=pltpu.CompilerParams(
            dimension_semantics=("parallel",),   # no cross-iteration state
            vmem_limit_bytes=48 * 1024 * 1024,
        ),
        cost_estimate=cost,
    )(anchor, positive, negative)

    pos = dists[0]                                # (B,)
    neg = dists[1]                                # (B,)
    hinge = jnp.maximum(margin + pos - neg, 0.0)  # tiny (B,) op; done in wrapper
    loss = jnp.mean(hinge) if reduction == 'mean' else jnp.sum(hinge)

    return {
        'loss': loss,
        'neg_dist': jax.lax.stop_gradient(neg),   # .detach() equivalent
        'pos_dist': jax.lax.stop_gradient(pos),
    }


def _reference(anchor, positive, negative, margin=1.0, reduction='mean'):
    pos = jnp.sqrt(jnp.sum((anchor - positive + _PDIST_EPS) ** 2, axis=-1))
    neg = jnp.sqrt(jnp.sum((anchor - negative + _PDIST_EPS) ** 2, axis=-1))
    hinge = jnp.maximum(margin + pos - neg, 0.0)
    loss = jnp.mean(hinge) if reduction == 'mean' else jnp.sum(hinge)
    return {'loss': loss, 'neg_dist': neg, 'pos_dist': pos}


if __name__ == "__main__":
    key = jax.random.PRNGKey(0)

    def _check(B, D, reduction, block_rows=None):
        k = jax.random.fold_in(key, B * 131 + D)
        k1, k2, k3 = jax.random.split(k, 3)
        a = jax.random.normal(k1, (B, D), dtype=jnp.float32)
        p = jax.random.normal(k2, (B, D), dtype=jnp.float32)
        n = jax.random.normal(k3, (B, D), dtype=jnp.float32)

        out = triplet_loss(a, p, n, margin=1.0, reduction=reduction,
                           block_rows=block_rows)
        jax.block_until_ready(out['loss'])

        ref = _reference(a, p, n, margin=1.0, reduction=reduction)
        assert jnp.allclose(out['loss'], ref['loss'], atol=1e-4, rtol=1e-5), (B, D, reduction)
        assert jnp.allclose(out['pos_dist'], ref['pos_dist'], atol=1e-5, rtol=1e-5), (B, D)
        assert jnp.allclose(out['neg_dist'], ref['neg_dist'], atol=1e-5, rtol=1e-5), (B, D)

    # Small embedding batch consistent with the module's forward (single exact tile).
    _check(8, 32, 'mean')
    # Multi-tile grid with a ragged last tile (grid=3, last tile has 44 valid rows,
    # feature dim not a multiple of 128 -> full-extent D block, no padding copies).
    _check(300, 160, 'mean', block_rows=128)
    _check(300, 160, 'sum', block_rows=128)

    print("KERNEL_OK")
</pallas_src>

<mosaic_0001>
module attributes {stable_mosaic.version = 11 : i64} {
  func.func @_triplet_kernel(%arg0: i32, %arg1: memref<8x32xf32, #tpu.memory_space<vmem>>, %arg2: memref<8x32xf32, #tpu.memory_space<vmem>>, %arg3: memref<8x32xf32, #tpu.memory_space<vmem>>, %arg4: memref<2x8xf32, #tpu.memory_space<vmem>>) attributes {dimension_semantics = [#tpu.dimension_semantics<parallel>], iteration_bounds = array<i64: 1>, scalar_prefetch = 0 : i64, scratch_operands = 0 : i64, tpu.core_type = #tpu.core_type<tc>, window_params = [{transform_indices = @transform_0, window_bounds = array<i64: 8, 32>}, {transform_indices = @transform_1, window_bounds = array<i64: 8, 32>}, {transform_indices = @transform_2, window_bounds = array<i64: 8, 32>}, {transform_indices = @transform_3, window_bounds = array<i64: 2, 8>}]} {
    %c0 = arith.constant 0 : index
    %c0_0 = arith.constant 0 : index
    %0 = vector.load %arg1[%c0, %c0_0] : memref<8x32xf32, #tpu.memory_space<vmem>>, vector<8x32xf32>
    %c0_1 = arith.constant 0 : index
    %c0_2 = arith.constant 0 : index
    %1 = vector.load %arg2[%c0_1, %c0_2] : memref<8x32xf32, #tpu.memory_space<vmem>>, vector<8x32xf32>
    %c0_3 = arith.constant 0 : index
    %c0_4 = arith.constant 0 : index
    %2 = vector.load %arg3[%c0_3, %c0_4] : memref<8x32xf32, #tpu.memory_space<vmem>>, vector<8x32xf32>
    %3 = arith.subf %0, %1 : vector<8x32xf32>
    %cst = arith.constant 9.99999997E-7 : f32
    %4 = vector.broadcast %cst : f32 to vector<8x32xf32>
    %5 = arith.addf %3, %4 : vector<8x32xf32>
    %6 = arith.subf %0, %2 : vector<8x32xf32>
    %cst_5 = arith.constant 9.99999997E-7 : f32
    %7 = vector.broadcast %cst_5 : f32 to vector<8x32xf32>
    %8 = arith.addf %6, %7 : vector<8x32xf32>
    %9 = arith.mulf %5, %5 : vector<8x32xf32>
    %cst_6 = arith.constant dense<0.000000e+00> : vector<8xf32>
    %10 = vector.multi_reduction <add>, %9, %cst_6 [1] : vector<8x32xf32> to vector<8xf32>
    %11 = math.sqrt %10 : vector<8xf32>
    %12 = arith.mulf %8, %8 : vector<8x32xf32>
    %cst_7 = arith.constant dense<0.000000e+00> : vector<8xf32>
    %13 = vector.multi_reduction <add>, %12, %cst_7 [1] : vector<8x32xf32> to vector<8xf32>
    %14 = math.sqrt %13 : vector<8xf32>
    %15 = vector.shape_cast %11 : vector<8xf32> to vector<1x8xf32>
    %16 = vector.shape_cast %14 : vector<8xf32> to vector<1x8xf32>
    %17 = tpu.concatenate %15, %16 in 0 : vector<1x8xf32>, vector<1x8xf32> -> vector<2x8xf32>
    %c0_8 = arith.constant 0 : index
    %c0_9 = arith.constant 0 : index
    %18 = vector.load %arg4[%c0_8, %c0_9] : memref<2x8xf32, #tpu.memory_space<vmem>>, vector<2x8xf32>
    tpu.vector_store %arg4[%c0_8, %c0_9], %17 {strides = array<i32>} : memref<2x8xf32, #tpu.memory_space<vmem>>, vector<2x8xf32>,
    return
  }
  func.func @transform_0(%arg0: i32) -> (i32, i32) {
    %c0_i32 = arith.constant 0 : i32
    %c0_i32_0 = arith.constant 0 : i32
    return %arg0, %c0_i32 : i32, i32
  }
  func.func @transform_1(%arg0: i32) -> (i32, i32) {
    %c0_i32 = arith.constant 0 : i32
    %c0_i32_0 = arith.constant 0 : i32
    return %arg0, %c0_i32 : i32, i32
  }
  func.func @transform_2(%arg0: i32) -> (i32, i32) {
    %c0_i32 = arith.constant 0 : i32
    %c0_i32_0 = arith.constant 0 : i32
    return %arg0, %c0_i32 : i32, i32
  }
  func.func @transform_3(%arg0: i32) -> (i32, i32) {
    %c0_i32 = arith.constant 0 : i32
    %c0_i32_0 = arith.constant 0 : i32
    return %c0_i32, %arg0 : i32, i32
  }
}

</mosaic_0001>

<bundles_post_ra>
// kernel: tpu_custom_call.1
= control target key start
LH: loop header
LB: loop body
LE: loop exit
PB: predicated region body
PF: predicated region fallthrough
CT: control target
= control target key end

     0   :  { %8 = vsyncpa [#allocation3], 0  ;;  %s288_s0 = inlined_call_operand.hbm [shape: f32[8,32], index: 0, kind: input, shape index: {}]   ;;  %s289_s1 = inlined_call_operand.hbm [shape: f32[8,32], index: 1, kind: input, shape index: {}]   ;;  %s290_s2 = inlined_call_operand.hbm [shape: f32[8,32], index: 2, kind: input, shape index: {}]   ;;  %s291_s3 = inlined_call_operand.hbm [shape: f32[2,8], index: 3, kind: output, shape index: {}]  }
   0x1   :  { %9 = vsyncpa [#allocation6], 0 }
   0x2   :  { %10 = vsyncpa [#allocation4], 0  ;;  %s216_s12 = smov [#allocation5]   ;;  %s217_s14 = smov [#allocation2]  }
   0x3   :  { %s27_s13 = sshll.u32 %s216_s12, 4  ;;  %s17_s15 = sshll.u32 %s217_s14, 4  ;;  %s28_s13 = int_to_ptr.vmem [resolvable:$true] %s27_s13  ;;  %s18_s15 = int_to_ptr.vmem [resolvable:$true] %s17_s15 }
   0x4   :  { %s122_s18 = scalar_lea.hbm %s289_s1, 128 }
   0x5   :  { %p123_p0 = scmp.ne.s32.totalorder %s289_s1, %s122_s18  ;;  %p126_p1 = scmp.lt.u32.totalorder %s122_s18, %s289_s1 }
   0x7   :  { %p128_p2 = pnand %p126_p1, %p123_p0 }
   0x9   :  { %131 = shalt.err (!%p128_p2)
}
   0xa   :  { %s132_s23 = scalar_lea.vmem %s28_s13, 128  ;;  %p137_p4 = scmp.lt.s32.totalorder %s28_s13, %s28_s13 }
   0xb   :  { %p133_p3 = scmp.ne.s32.totalorder %s28_s13, %s132_s23  ;;  %p138_p5 = scmp.lt.s32.totalorder %s132_s23, %s132_s23 }
   0xd   :  { %p139_p6 = por %p138_p5, %p137_p4 }
   0xf   :  { %p140_p7 = pnand %p139_p6, %p133_p3 }
  0x11   :  { %143 = shalt.err (!%p140_p7)
}
  0x12   :  { %30 = dma.hbm_to_vmem [thread:$0]  %s289_s1, 128, %s28_s13, [#allocation6]  }
  0x13   :  { %s144_s28 = scalar_lea.hbm %s288_s0, 128 }
  0x14   :  { %p145_p8 = scmp.ne.s32.totalorder %s288_s0, %s144_s28  ;;  %p148_p9 = scmp.lt.u32.totalorder %s144_s28, %s288_s0 }
  0x16   :  { %p150_p10 = pnand %p148_p9, %p145_p8 }
  0x18   :  { %153 = shalt.err (!%p150_p10)
}
  0x19   :  { %s154_s6 = scalar_lea.vmem %s18_s15, 128  ;;  %p159_p12 = scmp.lt.s32.totalorder %s18_s15, %s18_s15 }
  0x1a   :  { %p155_p11 = scmp.ne.s32.totalorder %s18_s15, %s154_s6  ;;  %p160_p13 = scmp.lt.s32.totalorder %s154_s6, %s154_s6 }
  0x1c   :  { %p161_p0 = por %p160_p13, %p159_p12 }
  0x1e   :  { %p162_p1 = pnand %p161_p0, %p155_p11 }
  0x20   :  { %165 = shalt.err (!%p162_p1)
}
  0x21   :  { %20 = dma.hbm_to_vmem [thread:$0]  %s288_s0, 128, %s18_s15, [#allocation3]  }
  0x22   :  { %s218_s8 = smov [#allocation7]   ;;  %s166_s12 = scalar_lea.hbm %s290_s2, 128 }
  0x23   :  { %s37_s9 = sshll.u32 %s218_s8, 4  ;;  %p167_p2 = scmp.ne.s32.totalorder %s290_s2, %s166_s12  ;;  %s38_s9 = int_to_ptr.vmem [resolvable:$true] %s37_s9 }
  0x24   :  { %p170_p3 = scmp.lt.u32.totalorder %s166_s12, %s290_s2 }
  0x26   :  { %p172_p4 = pnand %p170_p3, %p167_p2 }
  0x28   :  { %175 = shalt.err (!%p172_p4)
}
  0x29   :  { %s176_s18 = scalar_lea.vmem %s38_s9, 128  ;;  %p181_p6 = scmp.lt.s32.totalorder %s38_s9, %s38_s9 }
  0x2a   :  { %p177_p5 = scmp.ne.s32.totalorder %s38_s9, %s176_s18  ;;  %p182_p7 = scmp.lt.s32.totalorder %s176_s18, %s176_s18 }
  0x2c   :  { %p183_p8 = por %p182_p7, %p181_p6 }
  0x2e   :  { %p184_p9 = pnand %p183_p8, %p177_p5 }
  0x30   :  { %187 = shalt.err (!%p184_p9)
}
  0x31   :  { %40 = dma.hbm_to_vmem [thread:$0]  %s290_s2, 128, %s38_s9, [#allocation6]  }
  0x32   :  { %210 = dma.done.wait [#allocation3], 128  }
  0x33   :  { %211 = vsyncadd [#allocation3], 4294967168 }
  0x34   :  { %212 = dma.done.wait [#allocation6], 256  }
  0x35   :  { %213 = vsyncadd [#allocation6], 4294967040  ;;  %v50_v0 = vld [vmem:[#allocation2] sm:$0xff]  ;;  %v51_v1 = vld [vmem:[#allocation5] sm:$0xff]  ;;  %vm58_vm0 = vcmask 261120   ;;  %v81_v13 = vlaneseq  ;;  %s219_s2 = smov [#allocation8]  }
  0x36   :  { %v52_v2 = vld [vmem:[#allocation7] sm:$0xff]  ;;  %v53_v3 = vsub.f32 %v50_v0, %v51_v1  ;;  %s104_s19 = sshll.u32 %s219_s2, 4  ;;  %vm94_vm5 = vcmask 1040384   ;;  %vm96_vm6 = vcmask 58368   ;;  %s105_s19 = int_to_ptr.vmem [resolvable:$true] %s104_s19 }
  0x37   :  { %v55_v4 = vsub.f32 %v50_v0, %v52_v2  ;;  %v82_v16 = vand.u32 127, %v81_v13  ;;  %v84_v17 = vshrl.u32 %v81_v13, 7  ;;  %s188_s20 = scalar_lea.vmem %s105_s19, 32  ;;  %p193_p11 = scmp.lt.s32.totalorder %s105_s19, %s105_s19 }
  0x38   :  { %v54_v5 = vadd.f32 1e-06, %v53_v3  ;;  %p189_p10 = scmp.ne.s32.totalorder %s105_s19, %s188_s20  ;;  %p194_p12 = scmp.lt.s32.totalorder %s188_s20, %s188_s20 }
  0x39   :  { %v56_v6 = vadd.f32 1e-06, %v55_v4  ;;  %v85_v22 = vsub.s32 %v82_v16, %v84_v17 }
  0x3a   :  { %v57_v7 = vmul.f32 %v54_v5, %v54_v5  ;;  %p195_p13 = por %p194_p12, %p193_p11 }
  0x3b   :  { %v69_v8 = vmul.f32 %v56_v6, %v56_v6 }
  0x3c   :  { %v59_v9 = vsel %vm58_vm0, %v57_v7, 0.0  ;;  %p196_p0 = pnand %p195_p13, %p189_p10 }
  0x3d   :  { %60 = vadd.xlane.f32.xlu0 %v59_v9  ;;  %v70_v10 = vsel %vm58_vm0, %v69_v8, 0.0 }
  0x41   :  { %71 = vadd.xlane.f32.xlu0 %v70_v10 }
  0xca   :  { %v61_v11 = vpop.xlane.xlu0 %60 }
  0xcb   :  { %118 = vrsqrt.f32 %v61_v11  ;;  %vm64_vm1 = vcmp.eq.f32.partialorder %v61_v11, inf  ;;  %v67_v20 = vand.u32 2147483648, %v61_v11  ;;  %vm66_vm2 = vcmp.eq.f32.partialorder %v61_v11, 0.0 }
  0xce   :  { %v72_v12 = vpop.xlane.xlu0 %71 }
  0xcf   :  { %120 = vrsqrt.f32 %v72_v12  ;;  %vm75_vm3 = vcmp.eq.f32.partialorder %v72_v12, inf  ;;  %v78_v23 = vand.u32 2147483648, %v72_v12  ;;  %vm77_vm4 = vcmp.eq.f32.partialorder %v72_v12, 0.0 }
  0xd5   :  { %v119_v14 = vpop.eup %118 }
  0xd6   :  { %v63_v15 = vmul.f32 %v119_v14, %v61_v11 }
  0xd8   :  { %v65_v18 = vsel %vm64_vm1, %v61_v11, %v63_v15 }
  0xd9   :  { %v121_v19 = vpop.eup %120  ;;  %v68_v24 = vsel %vm66_vm2, %v67_v20, %v65_v18 }
  0xda   :  { %v74_v21 = vmul.f32 %v121_v19, %v72_v12  ;;  %v86_v27 = vrot.slane %v68_v24, %v85_v22 }
  0xdc   :  { %v76_v25 = vsel %vm75_vm3, %v72_v12, %v74_v21 }
  0xdd   :  { %v79_v26 = vsel %vm77_vm4, %v78_v23, %v76_v25 }
  0xde   :  { %v92_v28 = vrot.slane %v79_v26, %v85_v22 }
  0xe0   :  { %v95_v29 = vsel %vm94_vm5, %v86_v27, %v92_v28 }
  0xe1   :  { %97 = vst.msk [vmem:[#allocation8] sm:$0x3] %vm96_vm6, %v95_v29 }
  0xe2   :  { %199 = shalt.err (!%p196_p0)
}
  0xe3   :  { %s200_s23 = scalar_lea.hbm %s291_s3, 32 }
  0xe4   :  { %p201_p1 = scmp.ne.s32.totalorder %s291_s3, %s200_s23  ;;  %p204_p2 = scmp.lt.u32.totalorder %s200_s23, %s291_s3 }
  0xe6   :  { %p206_p3 = pnand %p204_p2, %p201_p1 }
  0xe8   :  { %209 = shalt.err (!%p206_p3)
}
  0xe9   :  { %107 = dma.vmem_to_hbm [thread:$0]  %s105_s19, 32, %s291_s3, [#allocation4]  }
  0xea   :  { %214 = dma.done.wait [#allocation4], 32  }
  0xeb   :  { %215 = vsyncadd [#allocation4], 4294967264 }
  0xec   :  { %111 = vsyncpa [#allocation3], 1 }
  0xed   :  { %112 = vsyncpa [#allocation6], 1 }
  0xee   :  { %113 = vsyncpa [#allocation4], 1 }

</bundles_post_ra>
